<compile_context>
chip_gen: v5e
topology: v5e:2x2
jax: 0.10.0
libtpu: 0.0.40
codegen_flags: <defaults>
</compile_context>

<pallas_src>
import functools

import jax
import jax.numpy as jnp
from jax.experimental import pallas as pl
from jax.experimental.pallas import tpu as pltpu


# ----------------------------------------------------------------------------- kernels
def encoder_kernel(x_ref, w1_ref, b1_ref,
                   w2mu_ref, b2mu_ref, w2sig_ref, b2sig_ref,
                   mu_ref, sigma_ref):
    """Fused 2-layer MLP, dual-head output.  All operands resident in VMEM (no grid)."""
    # Layer 1: bf16 x bf16 -> f32 accumulate on the MXU; bias + ReLU on the VPU.
    h1 = jnp.dot(x_ref[...], w1_ref[...],
                 preferred_element_type=jnp.float32) + b1_ref[...]
    h1 = jnp.maximum(h1, 0.0).astype(jnp.bfloat16)        # keep MXU on bf16 path

    # mu head
    mu_ref[...] = jnp.dot(h1, w2mu_ref[...],
                          preferred_element_type=jnp.float32) + b2mu_ref[...]

    # sigma head: scale = exp(log_var), exactly as the PyTorch module
    # (dist.Normal(mu, torch.exp(log_var))) — no 0.5 factor by spec.  exp -> EUP.
    log_var = jnp.dot(h1, w2sig_ref[...],
                      preferred_element_type=jnp.float32) + b2sig_ref[...]
    sigma_ref[...] = jnp.exp(log_var)


def encoder_mu_kernel(x_ref, w1_ref, b1_ref, w2mu_ref, b2mu_ref, mu_ref):
    """return_mu=True variant: skips the sigma head entirely (no DMA of the sigma
    columns of w2, no exp, no sigma store)."""
    h1 = jnp.dot(x_ref[...], w1_ref[...],
                 preferred_element_type=jnp.float32) + b1_ref[...]
    h1 = jnp.maximum(h1, 0.0).astype(jnp.bfloat16)
    mu_ref[...] = jnp.dot(h1, w2mu_ref[...],
                          preferred_element_type=jnp.float32) + b2mu_ref[...]


def _vmem_spec():
    # Whole-array resident in VMEM; no grid, no pipelining, no double-buffering.
    return pl.BlockSpec(memory_space=pltpu.MemorySpace.VMEM)


# ----------------------------------------------------------------------------- wrapper
def prepare_params(params, d_latent):
    """One-time parameter preparation (cast to bf16, split the second layer into
    mu / sigma heads).  Keeps the per-call path free of weight-casting ops."""
    w1, b1, w2, b2 = params
    b1 = jnp.asarray(b1, jnp.float32).reshape(1, -1)
    b2 = jnp.asarray(b2, jnp.float32).reshape(1, -1)
    return {
        "w1": jnp.asarray(w1, jnp.bfloat16),
        "b1": b1,
        "w2_mu": jnp.asarray(w2[:, :d_latent], jnp.bfloat16),
        "b2_mu": b2[:, :d_latent],
        "w2_sig": jnp.asarray(w2[:, d_latent:], jnp.bfloat16),
        "b2_sig": b2[:, d_latent:],
    }


@functools.partial(jax.jit, static_argnames=("d_latent", "return_mu"))
def encoder_forward(x_nchw, prepared, d_latent, return_mu=False):
    """Equivalent of Encoder.forward.

    Returns (mu, sigma) — the parameters of dist.Normal(mu, sigma) — or just mu
    when return_mu=True.
    """
    B = x_nchw.shape[0]
    # Same as torch .view(B, -1); cast matmul operand to bf16 (f32 accumulation
    # inside the kernel preserves accuracy).
    x_flat = x_nchw.reshape(B, -1).astype(jnp.bfloat16)

    if return_mu:
        mu = pl.pallas_call(
            encoder_mu_kernel,
            out_shape=jax.ShapeDtypeStruct((B, d_latent), jnp.float32),
            in_specs=[_vmem_spec() for _ in range(5)],
            out_specs=_vmem_spec(),
        )(x_flat, prepared["w1"], prepared["b1"],
          prepared["w2_mu"], prepared["b2_mu"])
        return mu

    mu, sigma = pl.pallas_call(
        encoder_kernel,
        out_shape=(
            jax.ShapeDtypeStruct((B, d_latent), jnp.float32),
            jax.ShapeDtypeStruct((B, d_latent), jnp.float32),
        ),
        in_specs=[_vmem_spec() for _ in range(7)],
        out_specs=(_vmem_spec(), _vmem_spec()),
    )(x_flat, prepared["w1"], prepared["b1"],
      prepared["w2_mu"], prepared["b2_mu"],
      prepared["w2_sig"], prepared["b2_sig"])

    return mu, sigma  # parameters of dist.Normal(mu, sigma)


def init_params(key, d_in, hidden, d_latent):
    """Deterministic init matching torch.nn.Linear default (U[-1/sqrt(fan_in), +...])."""
    k1, k2, k3, k4 = jax.random.split(key, 4)
    lim1 = 1.0 / jnp.sqrt(d_in)
    lim2 = 1.0 / jnp.sqrt(hidden)
    w1 = jax.random.uniform(k1, (d_in, hidden), jnp.float32, -lim1, lim1)
    b1 = jax.random.uniform(k2, (1, hidden), jnp.float32, -lim1, lim1)
    w2 = jax.random.uniform(k3, (hidden, 2 * d_latent), jnp.float32, -lim2, lim2)
    b2 = jax.random.uniform(k4, (1, 2 * d_latent), jnp.float32, -lim2, lim2)
    return w1, b1, w2, b2


# ----------------------------------------------------------------------------- demo / test
if __name__ == "__main__":
    # Small shapes consistent with the module: NCHW input, flattened inside forward.
    B, C, H, W = 2, 4, 16, 16          # D_in = 1024
    HIDDEN = 128
    D_LATENT = 16

    key = jax.random.PRNGKey(0)
    kx, kp = jax.random.split(key)
    x = jax.random.normal(kx, (B, C, H, W), jnp.float32)
    params = init_params(kp, C * H * W, HIDDEN, D_LATENT)
    prepared = prepare_params(params, D_LATENT)

    mu, sigma = encoder_forward(x, prepared, D_LATENT)
    jax.block_until_ready((mu, sigma))

    # Reference in plain JAX with the same bf16 quantization of x / W (f32 accumulate),
    # so the comparison isolates the kernel rather than the precision choice.
    w1, b1, w2, b2 = params
    xf = x.reshape(B, -1).astype(jnp.bfloat16).astype(jnp.float32)
    w1q = w1.astype(jnp.bfloat16).astype(jnp.float32)
    w2q = w2.astype(jnp.bfloat16).astype(jnp.float32)
    h1 = jnp.maximum(xf @ w1q + b1, 0.0)
    h1 = h1.astype(jnp.bfloat16).astype(jnp.float32)
    h2 = h1 @ w2q + b2
    mu_ref = h2[:, :D_LATENT]
    sigma_ref = jnp.exp(h2[:, D_LATENT:])   # scale = exp(log_var), per the module

    assert mu.shape == (B, D_LATENT) and sigma.shape == (B, D_LATENT)
    assert jnp.allclose(mu, mu_ref, atol=1e-2, rtol=1e-2)
    assert jnp.allclose(sigma, sigma_ref, atol=1e-2, rtol=1e-2)

    # return_mu=True path (dedicated kernel without the sigma head).
    mu_only = encoder_forward(x, prepared, D_LATENT, return_mu=True)
    jax.block_until_ready(mu_only)
    assert mu_only.shape == (B, D_LATENT)
    assert jnp.allclose(mu_only, mu_ref, atol=1e-2, rtol=1e-2)

    print("KERNEL_OK")
</pallas_src>

<mosaic_0001>
module attributes {stable_mosaic.version = 11 : i64} {
  func.func @encoder_kernel(%arg0: memref<2x1024xbf16, #tpu.memory_space<vmem>>, %arg1: memref<1024x128xbf16, #tpu.memory_space<vmem>>, %arg2: memref<1x128xf32, #tpu.memory_space<vmem>>, %arg3: memref<128x16xbf16, #tpu.memory_space<vmem>>, %arg4: memref<1x16xf32, #tpu.memory_space<vmem>>, %arg5: memref<128x16xbf16, #tpu.memory_space<vmem>>, %arg6: memref<1x16xf32, #tpu.memory_space<vmem>>, %arg7: memref<2x16xf32, #tpu.memory_space<vmem>>, %arg8: memref<2x16xf32, #tpu.memory_space<vmem>>) attributes {dimension_semantics = [], scalar_prefetch = 0 : i64, scratch_operands = 0 : i64, tpu.core_type = #tpu.core_type<tc>} {
    %c0 = arith.constant 0 : index
    %c0_0 = arith.constant 0 : index
    %0 = vector.load %arg0[%c0, %c0_0] : memref<2x1024xbf16, #tpu.memory_space<vmem>>, vector<2x1024xbf16>
    %c0_1 = arith.constant 0 : index
    %c0_2 = arith.constant 0 : index
    %1 = vector.load %arg1[%c0_1, %c0_2] : memref<1024x128xbf16, #tpu.memory_space<vmem>>, vector<1024x128xbf16>
    %cst = arith.constant dense<0.000000e+00> : vector<2x128xf32>
    %2 = tpu.matmul %0, %1, %cst {dimension_numbers = #tpu.dot_dimension_numbers<[1], [0], [0], [1], [0, 0, 1, 1], [], []>} : vector<2x1024xbf16>, vector<1024x128xbf16>, vector<2x128xf32> -> vector<2x128xf32>
    %c0_3 = arith.constant 0 : index
    %c0_4 = arith.constant 0 : index
    %3 = vector.load %arg2[%c0_3, %c0_4] : memref<1x128xf32, #tpu.memory_space<vmem>>, vector<1x128xf32>
    %4 = vector.broadcast %3 : vector<1x128xf32> to vector<2x128xf32>
    %5 = arith.addf %2, %4 : vector<2x128xf32>
    %cst_5 = arith.constant 0.000000e+00 : f32
    %6 = vector.broadcast %cst_5 : f32 to vector<2x128xf32>
    %7 = arith.maximumf %5, %6 : vector<2x128xf32>
    %8 = arith.truncf %7 : vector<2x128xf32> to vector<2x128xbf16>
    %c0_6 = arith.constant 0 : index
    %c0_7 = arith.constant 0 : index
    %9 = vector.load %arg3[%c0_6, %c0_7] : memref<128x16xbf16, #tpu.memory_space<vmem>>, vector<128x16xbf16>
    %cst_8 = arith.constant dense<0.000000e+00> : vector<2x16xf32>
    %10 = tpu.matmul %8, %9, %cst_8 {dimension_numbers = #tpu.dot_dimension_numbers<[1], [0], [0], [1], [0, 0, 1, 1], [], []>} : vector<2x128xbf16>, vector<128x16xbf16>, vector<2x16xf32> -> vector<2x16xf32>
    %c0_9 = arith.constant 0 : index
    %c0_10 = arith.constant 0 : index
    %11 = vector.load %arg4[%c0_9, %c0_10] : memref<1x16xf32, #tpu.memory_space<vmem>>, vector<1x16xf32>
    %12 = vector.broadcast %11 : vector<1x16xf32> to vector<2x16xf32>
    %13 = arith.addf %10, %12 : vector<2x16xf32>
    %c0_11 = arith.constant 0 : index
    %c0_12 = arith.constant 0 : index
    %14 = vector.load %arg7[%c0_11, %c0_12] : memref<2x16xf32, #tpu.memory_space<vmem>>, vector<2x16xf32>
    tpu.vector_store %arg7[%c0_11, %c0_12], %13 {strides = array<i32>} : memref<2x16xf32, #tpu.memory_space<vmem>>, vector<2x16xf32>,
    %c0_13 = arith.constant 0 : index
    %c0_14 = arith.constant 0 : index
    %15 = vector.load %arg5[%c0_13, %c0_14] : memref<128x16xbf16, #tpu.memory_space<vmem>>, vector<128x16xbf16>
    %cst_15 = arith.constant dense<0.000000e+00> : vector<2x16xf32>
    %16 = tpu.matmul %8, %15, %cst_15 {dimension_numbers = #tpu.dot_dimension_numbers<[1], [0], [0], [1], [0, 0, 1, 1], [], []>} : vector<2x128xbf16>, vector<128x16xbf16>, vector<2x16xf32> -> vector<2x16xf32>
    %c0_16 = arith.constant 0 : index
    %c0_17 = arith.constant 0 : index
    %17 = vector.load %arg6[%c0_16, %c0_17] : memref<1x16xf32, #tpu.memory_space<vmem>>, vector<1x16xf32>
    %18 = vector.broadcast %17 : vector<1x16xf32> to vector<2x16xf32>
    %19 = arith.addf %16, %18 : vector<2x16xf32>
    %20 = math.exp %19 : vector<2x16xf32>
    %c0_18 = arith.constant 0 : index
    %c0_19 = arith.constant 0 : index
    %21 = vector.load %arg8[%c0_18, %c0_19] : memref<2x16xf32, #tpu.memory_space<vmem>>, vector<2x16xf32>
    tpu.vector_store %arg8[%c0_18, %c0_19], %20 {strides = array<i32>} : memref<2x16xf32, #tpu.memory_space<vmem>>, vector<2x16xf32>,
    return
  }
}

</mosaic_0001>

<bundles_post_ra>
// kernel: encoder_forward.1
= control target key start
LH: loop header
LB: loop body
LE: loop exit
PB: predicated region body
PF: predicated region fallthrough
CT: control target
= control target key end

     0   :  { %14 = vsyncpa [#allocation3], 0  ;;  %s1496_s0 = inlined_call_operand.vmem [shape: bf16[2,1024], index: 0, kind: input, shape index: {}]   ;;  %s1497_s1 = inlined_call_operand.hbm [shape: bf16[1024,128], index: 1, kind: input, shape index: {}]   ;;  %s1498_s2 = inlined_call_operand.vmem [shape: f32[1,128], index: 2, kind: input, shape index: {}]   ;;  %s1499_s3 = inlined_call_operand.vmem [shape: bf16[128,16], index: 3, kind: input, shape index: {}]   ;;  %s1500_s4 = inlined_call_operand.vmem [shape: f32[1,16], index: 4, kind: input, shape index: {}]   ;;  %s1501_s5 = inlined_call_operand.vmem [shape: bf16[128,16], index: 5, kind: input, shape index: {}]   ;;  %s1502_s6 = inlined_call_operand.vmem [shape: f32[1,16], index: 6, kind: input, shape index: {}]   ;;  %s1503_s7 = inlined_call_operand.hbm [shape: f32[2,16], index: 7, kind: output, shape index: {0}]   ;;  %s1504_s8 = inlined_call_operand.hbm [shape: f32[2,16], index: 8, kind: output, shape index: {1}]  }
   0x1   :  { %15 = vsyncpa [#allocation4], 0 }
   0x2   :  { %16 = vsyncpa [#allocation7], 0  ;;  %s23_s29 = sshll.u32 %s1497_s1, 4  ;;  %s1375_s30 = smov [#allocation2]   ;;  %s24_s29 = int_to_ptr.hbm [resolvable:$true] %s23_s29 }
   0x3   :  { %s25_s9 = sshll.u32 %s1375_s30, 4  ;;  %s1376_s10 = smov 64   ;;  %s26_s9 = int_to_ptr.vmem [resolvable:$true] %s25_s9 }
   0x4   :  { %s1377_s11 = smov 4  }
   0x5   :  { %31 = dma.hbm_to_vmem [thread:$0]  %s24_s29, 8192, %s26_s9, [#allocation3], %s1376_s10, %s1376_s10, %s1377_s11  }
   0x6   :  { %1369 = dma.done.wait [#allocation3], 8192  }
   0x7   :  { %1370 = vsyncadd [#allocation3], 4294959104  ;;  %v1214_v0 = vld [vmem:[#allocation2 + $0x38] sm:$0xff]  ;;  %v1213_v4 = vld [vmem:[#allocation2 + $0x30] sm:$0xff]  ;;  %s1378_s23 = smov [#allocation5]   ;;  %s861_s27 = sshll.u32 %s1503_s7, 4  ;;  %s862_s27 = int_to_ptr.hbm [resolvable:$true] %s861_s27 }
   0x8   :  { %v1222_v1 = vld [vmem:[#allocation2 + $0x78] sm:$0xff]  ;;  %581 = vmatpush.bf16.msra.mxu0 %v1214_v0  ;;  %v1221_v5 = vld [vmem:[#allocation2 + $0x70] sm:$0xff]  ;;  %v1212_v8 = vld [vmem:[#allocation2 + $0x28] sm:$0xff]  ;;  %s859_s24 = sshll.u32 %s1378_s23, 4  ;;  %vm768_vm0 = vcmask 123904   ;;  %s872_s30 = sshll.u32 %s1504_s8, 4  ;;  %s860_s24 = int_to_ptr.vmem [resolvable:$true] %s859_s24  ;;  %s873_s30 = int_to_ptr.hbm [resolvable:$true] %s872_s30 }
   0x9   :  { %v1230_v2 = vld [vmem:[#allocation2 + $0xb8] sm:$0xff]  ;;  %594 = vmatpush.bf16.msra.mxu1 %v1222_v1  ;;  %v1229_v6 = vld [vmem:[#allocation2 + $0xb0] sm:$0xff]  ;;  %v1220_v9 = vld [vmem:[#allocation2 + $0x68] sm:$0xff] }
   0xa   :  { %v1238_v3 = vld [vmem:[#allocation2 + $0xf8] sm:$0xff]  ;;  %607 = vmatpush.bf16.msra.mxu2 %v1230_v2  ;;  %v1237_v7 = vld [vmem:[#allocation2 + $0xf0] sm:$0xff]  ;;  %v1228_v10 = vld [vmem:[#allocation2 + $0xa8] sm:$0xff] }
   0xb   :  { %620 = vmatpush.bf16.msra.mxu3 %v1238_v3  ;;  %v1236_v11 = vld [vmem:[#allocation2 + $0xe8] sm:$0xff]  ;;  %v1211_v12 = vld [vmem:[#allocation2 + $0x20] sm:$0xff]  ;;  %v46_v16 = vld [vmem:[%s1496_s0] sm:$0xff] }
   0xc   :  { %582 = vmatpush.bf16.msra.mxu0 %v1213_v4  ;;  %v1219_v13 = vld [vmem:[#allocation2 + $0x60] sm:$0xff]  ;;  %v1210_v17 = vld [vmem:[#allocation2 + $0x18] sm:$0xff]  ;;  %180 = vst [vmem:[#allocation1] ss:$9 sm:$0xff] %v46_v16  ;;  %v1209_v21 = vld [vmem:[#allocation2 + $0x10] sm:$0xff] }
   0xd   :  { %595 = vmatpush.bf16.msra.mxu1 %v1221_v5  ;;  %v1227_v14 = vld [vmem:[#allocation2 + $0xa0] sm:$0xff]  ;;  %v1218_v18 = vld [vmem:[#allocation2 + $0x58] sm:$0xff]  ;;  %v1217_v22 = vld [vmem:[#allocation2 + $0x50] sm:$0xff] }
   0xe   :  { %608 = vmatpush.bf16.msra.mxu2 %v1229_v6  ;;  %v1235_v15 = vld [vmem:[#allocation2 + $0xe0] sm:$0xff]  ;;  %v1226_v19 = vld [vmem:[#allocation2 + $0x98] sm:$0xff]  ;;  %v1225_v23 = vld [vmem:[#allocation2 + $0x90] sm:$0xff] }
   0xf   :  { %621 = vmatpush.bf16.msra.mxu3 %v1237_v7  ;;  %v1234_v20 = vld [vmem:[#allocation2 + $0xd8] sm:$0xff]  ;;  %v1233_v24 = vld [vmem:[#allocation2 + $0xd0] sm:$0xff]  ;;  %v1208_v25 = vld [vmem:[#allocation2 + $0x8] sm:$0xff] }
  0x10   :  { %583 = vmatpush.bf16.msra.mxu0 %v1212_v8  ;;  %v1216_v26 = vld [vmem:[#allocation2 + $0x48] sm:$0xff]  ;;  %v1207_v29 = vld [vmem:[#allocation2] sm:$0xff]  ;;  %v1246_v33 = vld [vmem:[#allocation2 + $0x138] sm:$0xff] }
  0x11   :  { %596 = vmatpush.bf16.msra.mxu1 %v1220_v9  ;;  %v1224_v27 = vld [vmem:[#allocation2 + $0x88] sm:$0xff]  ;;  %v1215_v30 = vld [vmem:[#allocation2 + $0x40] sm:$0xff]  ;;  %v1254_v34 = vld [vmem:[#allocation2 + $0x178] sm:$0xff] }
  0x12   :  { %609 = vmatpush.bf16.msra.mxu2 %v1228_v10  ;;  %v1232_v28 = vld [vmem:[#allocation2 + $0xc8] sm:$0xff]  ;;  %v1223_v31 = vld [vmem:[#allocation2 + $0x80] sm:$0xff]  ;;  %v1262_v35 = vld [vmem:[#allocation2 + $0x1b8] sm:$0xff] }
  0x13   :  { %622 = vmatpush.bf16.msra.mxu3 %v1236_v11  ;;  %v1231_v32 = vld [vmem:[#allocation2 + $0xc0] sm:$0xff]  ;;  %v1270_v36 = vld [vmem:[#allocation2 + $0x1f8] sm:$0xff]  ;;  %v1245_v37 = vld [vmem:[#allocation2 + $0x130] sm:$0xff] }
  0x14   :  { %584 = vmatpush.bf16.msra.mxu0 %v1211_v12  ;;  %v183_v38 = vld [vmem:[#allocation1 + $0x12] sm:$0xff]  ;;  %v181_v39 = vld [vmem:[#allocation1] sm:$0xff]  ;;  %v182_v42 = vld [vmem:[#allocation1 + $0x9] sm:$0xff] }
  0x15   :  { %597 = vmatpush.bf16.msra.mxu1 %v1219_v13  ;;  %v1253_v40 = vld [vmem:[#allocation2 + $0x170] sm:$0xff]  ;;  %v1244_v45 = vld [vmem:[#allocation2 + $0x128] sm:$0xff]  ;;  %v1243_v49 = vld [vmem:[#allocation2 + $0x120] sm:$0xff] }
  0x16   :  { %610 = vmatpush.bf16.msra.mxu2 %v1227_v14  ;;  %v184_v41 = vld [vmem:[#allocation1 + $0x1b] sm:$0xff]  ;;  %v1252_v46 = vld [vmem:[#allocation2 + $0x168] sm:$0xff]  ;;  %v1251_v50 = vld [vmem:[#allocation2 + $0x160] sm:$0xff] }
  0x17   :  { %623 = vmatpush.bf16.msra.mxu3 %v1235_v15  ;;  %v1261_v43 = vld [vmem:[#allocation2 + $0x1b0] sm:$0xff]  ;;  %v1260_v47 = vld [vmem:[#allocation2 + $0x1a8] sm:$0xff]  ;;  %v1259_v51 = vld [vmem:[#allocation2 + $0x1a0] sm:$0xff] }
  0x18   :  { %585 = vmatpush.bf16.msra.mxu0 %v1210_v17  ;;  %v1269_v44 = vld [vmem:[#allocation2 + $0x1f0] sm:$0xff]  ;;  %v1268_v48 = vld [vmem:[#allocation2 + $0x1e8] sm:$0xff]  ;;  %v1267_v52 = vld [vmem:[#allocation2 + $0x1e0] sm:$0xff] }
  0x19   :  { %598 = vmatpush.bf16.msra.mxu1 %v1218_v18  ;;  %v1242_v53 = vld [vmem:[#allocation2 + $0x118] sm:$0xff]  ;;  %v1241_v57 = vld [vmem:[#allocation2 + $0x110] sm:$0xff]  ;;  %v1240_v61 = vld [vmem:[#allocation2 + $0x108] sm:$0xff] }
  0x1a   :  { %611 = vmatpush.bf16.msra.mxu2 %v1226_v19  ;;  %v1250_v54 = vld [vmem:[#allocation2 + $0x158] sm:$0xff]  ;;  %v1249_v58 = vld [vmem:[#allocation2 + $0x150] sm:$0xff]  ;;  %v1248_v62 = vld [vmem:[#allocation2 + $0x148] sm:$0xff] }
  0x1b   :  { %624 = vmatpush.bf16.msra.mxu3 %v1234_v20  ;;  %v1258_v55 = vld [vmem:[#allocation2 + $0x198] sm:$0xff]  ;;  %v1257_v59 = vld [vmem:[#allocation2 + $0x190] sm:$0xff]  ;;  %v1256_v63 = vld [vmem:[#allocation2 + $0x188] sm:$0xff] }
  0x1c   :  { %586 = vmatpush.bf16.msra.mxu0 %v1209_v21  ;;  %v1266_v56 = vld [vmem:[#allocation2 + $0x1d8] sm:$0xff]  ;;  %v1265_v60 = vld [vmem:[#allocation2 + $0x1d0] sm:$0xff]  ;;  %v1264_v0 = vld [vmem:[#allocation2 + $0x1c8] sm:$0xff] }
  0x1d   :  { %599 = vmatpush.bf16.msra.mxu1 %v1217_v22  ;;  %v1239_v1 = vld [vmem:[#allocation2 + $0x100] sm:$0xff]  ;;  %v187_v7 = vld [vmem:[#allocation1 + $0x36] sm:$0xff]  ;;  %v188_v8 = vld [vmem:[#allocation1 + $0x3f] sm:$0xff] }
  0x1e   :  { %612 = vmatpush.bf16.msra.mxu2 %v1225_v23  ;;  %v1247_v2 = vld [vmem:[#allocation2 + $0x140] sm:$0xff]  ;;  %v1278_v9 = vld [vmem:[%s1499_s3 + $0x38] sm:$0xff]  ;;  %v1277_v11 = vld [vmem:[%s1499_s3 + $0x30] sm:$0xff] }
  0x1f   :  { %625 = vmatpush.bf16.msra.mxu3 %v1233_v24  ;;  %v1255_v3 = vld [vmem:[#allocation2 + $0x180] sm:$0xff]  ;;  %v1286_v10 = vld [vmem:[%s1501_s5 + $0x38] sm:$0xff]  ;;  %v1285_v12 = vld [vmem:[%s1501_s5 + $0x30] sm:$0xff] }
  0x20   :  { %587 = vmatpush.bf16.msra.mxu0 %v1208_v25  ;;  %v1263_v4 = vld [vmem:[#allocation2 + $0x1c0] sm:$0xff]  ;;  %v1275_v15 = vld [vmem:[%s1499_s3 + $0x20] sm:$0xff]  ;;  %v1274_v17 = vld [vmem:[%s1499_s3 + $0x18] sm:$0xff] }
  0x21   :  { %600 = vmatpush.bf16.msra.mxu1 %v1216_v26  ;;  %v185_v5 = vld [vmem:[#allocation1 + $0x24] sm:$0xff]  ;;  %v186_v6 = vld [vmem:[#allocation1 + $0x2d] sm:$0xff]  ;;  %v1282_v18 = vld [vmem:[%s1501_s5 + $0x18] sm:$0xff] }
  0x22   :  { %613 = vmatpush.bf16.msra.mxu2 %v1224_v27  ;;  %v1276_v13 = vld [vmem:[%s1499_s3 + $0x28] sm:$0xff]  ;;  %v1283_v16 = vld [vmem:[%s1501_s5 + $0x20] sm:$0xff]  ;;  %v1273_v20 = vld [vmem:[%s1499_s3 + $0x10] sm:$0xff] }
  0x23   :  { %626 = vmatpush.bf16.msra.mxu3 %v1232_v28  ;;  %v1284_v14 = vld [vmem:[%s1501_s5 + $0x28] sm:$0xff]  ;;  %v1281_v21 = vld [vmem:[%s1501_s5 + $0x10] sm:$0xff]  ;;  %v1271_v28 = vld [vmem:[%s1499_s3] sm:$0xff] }
  0x24   :  { %588 = vmatpush.bf16.msra.mxu0 %v1207_v29  ;;  %v1272_v23 = vld [vmem:[%s1499_s3 + $0x8] sm:$0xff]  ;;  %v1279_v29 = vld [vmem:[%s1501_s5] sm:$0xff] }
  0x25   :  { %601 = vmatpush.bf16.msra.mxu1 %v1215_v30  ;;  %v1280_v24 = vld [vmem:[%s1501_s5 + $0x8] sm:$0xff] }
  0x26   :  { %614 = vmatpush.bf16.msra.mxu2 %v1223_v31  ;;  %v1292_v31 = vld [vmem:[%s1498_s2] ss:$0 sm:$0xff] }
  0x27   :  { %627 = vmatpush.bf16.msra.mxu3 %v1231_v32  ;;  %589 = vmatmul.bf16.vlgmr.msra.gmra.mxu0 %v181_v39 }
  0x28   :  { %633 = vmatpush.bf16.msrb.mxu0 %v1246_v33  ;;  %602 = vmatmul.bf16.vlgmr.msra.gmra.mxu1 %v182_v42 }
  0x29   :  { %646 = vmatpush.bf16.msrb.mxu1 %v1254_v34  ;;  %615 = vmatmul.bf16.vlgmr.msra.gmra.mxu2 %v183_v38 }
  0x2a   :  { %659 = vmatpush.bf16.msrb.mxu2 %v1262_v35  ;;  %628 = vmatmul.bf16.vlgmr.msra.gmra.mxu3 %v184_v41 }
  0x2b   :  { %672 = vmatpush.bf16.msrb.mxu3 %v1270_v36 }
  0x2c   :  { %634 = vmatpush.bf16.msrb.mxu0 %v1245_v37 }
  0x2d   :  { %647 = vmatpush.bf16.msrb.mxu1 %v1253_v40 }
  0x2e   :  { %660 = vmatpush.bf16.msrb.mxu2 %v1261_v43 }
  0x2f   :  { %673 = vmatpush.bf16.msrb.mxu3 %v1269_v44 }
  0x30   :  { %635 = vmatpush.bf16.msrb.mxu0 %v1244_v45 }
  0x31   :  { %648 = vmatpush.bf16.msrb.mxu1 %v1252_v46 }
  0x32   :  { %661 = vmatpush.bf16.msrb.mxu2 %v1260_v47 }
  0x33   :  { %674 = vmatpush.bf16.msrb.mxu3 %v1268_v48 }
  0x34   :  { %636 = vmatpush.bf16.msrb.mxu0 %v1243_v49 }
  0x35   :  { %649 = vmatpush.bf16.msrb.mxu1 %v1251_v50 }
  0x36   :  { %662 = vmatpush.bf16.msrb.mxu2 %v1259_v51 }
  0x37   :  { %675 = vmatpush.bf16.msrb.mxu3 %v1267_v52  ;;  %v1293_v52 = vld [vmem:[%s1500_s4] ss:$0 sm:$0xff]  ;;  %s1379_s4 = smov [#allocation6]  }
  0x38   :  { %637 = vmatpush.bf16.msrb.mxu0 %v1242_v53  ;;  %v1294_v53 = vld [vmem:[%s1502_s6] ss:$0 sm:$0xff]  ;;  %s870_s6 = sshll.u32 %s1379_s4, 4  ;;  %s871_s6 = int_to_ptr.vmem [resolvable:$true] %s870_s6 }
  0x39   :  { %650 = vmatpush.bf16.msrb.mxu1 %v1250_v54 }
  0x3a   :  { %663 = vmatpush.bf16.msrb.mxu2 %v1258_v55 }
  0x3b   :  { %676 = vmatpush.bf16.msrb.mxu3 %v1266_v56 }
  0x3c   :  { %638 = vmatpush.bf16.msrb.mxu0 %v1241_v57 }
  0x3d   :  { %651 = vmatpush.bf16.msrb.mxu1 %v1249_v58 }
  0x3e   :  { %664 = vmatpush.bf16.msrb.mxu2 %v1257_v59 }
  0x3f   :  { %677 = vmatpush.bf16.msrb.mxu3 %v1265_v60 }
  0x40   :  { %639 = vmatpush.bf16.msrb.mxu0 %v1240_v61 }
  0x41   :  { %652 = vmatpush.bf16.msrb.mxu1 %v1248_v62 }
  0x42   :  { %665 = vmatpush.bf16.msrb.mxu2 %v1256_v63 }
  0x43   :  { %678 = vmatpush.bf16.msrb.mxu3 %v1264_v0 }
  0x44   :  { %640 = vmatpush.bf16.msrb.mxu0 %v1239_v1 }
  0x45   :  { %653 = vmatpush.bf16.msrb.mxu1 %v1247_v2 }
  0x46   :  { %666 = vmatpush.bf16.msrb.mxu2 %v1255_v3 }
  0x47   :  { %679 = vmatpush.bf16.msrb.mxu3 %v1263_v4  ;;  %641 = vmatmul.bf16.vlgmr.msrb.gmra.mxu0 %v185_v5 }
  0x48   :  { %654 = vmatmul.bf16.vlgmr.msrb.gmra.mxu1 %v186_v6  ;;  %755 = vmatpush.bf16.msra.mxu0 %v1278_v9 }
  0x49   :  { %667 = vmatmul.bf16.vlgmr.msrb.gmra.mxu2 %v187_v7  ;;  %838 = vmatpush.bf16.msra.mxu1 %v1286_v10 }
  0x4a   :  { %680 = vmatmul.bf16.vlgmr.msrb.gmra.mxu3 %v188_v8 }
  0x4c   :  { %756 = vmatpush.bf16.msra.mxu0 %v1277_v11 }
  0x4d   :  { %839 = vmatpush.bf16.msra.mxu1 %v1285_v12 }
  0x50   :  { %757 = vmatpush.bf16.msra.mxu0 %v1276_v13 }
  0x51   :  { %840 = vmatpush.bf16.msra.mxu1 %v1284_v14 }
  0x54   :  { %758 = vmatpush.bf16.msra.mxu0 %v1275_v15 }
  0x55   :  { %841 = vmatpush.bf16.msra.mxu1 %v1283_v16 }
  0x58   :  { %759 = vmatpush.bf16.msra.mxu0 %v1274_v17 }
  0x59   :  { %842 = vmatpush.bf16.msra.mxu1 %v1282_v18 }
  0x5c   :  { %760 = vmatpush.bf16.msra.mxu0 %v1273_v20 }
  0x5d   :  { %843 = vmatpush.bf16.msra.mxu1 %v1281_v21 }
  0x60   :  { %761 = vmatpush.bf16.msra.mxu0 %v1272_v23 }
  0x61   :  { %844 = vmatpush.bf16.msra.mxu1 %v1280_v24 }
  0x64   :  { %762 = vmatpush.bf16.msra.mxu0 %v1271_v28 }
  0x65   :  { %845 = vmatpush.bf16.msra.mxu1 %v1279_v29 }
  0xa4   :  { %v590_v19 = vpop.f32.mrf.mxu0 }
  0xa5   :  { %v603_v22 = vpop.f32.mrf.mxu1  ;;  %v591_v34 = vadd.f32 %v1292_v31, %v590_v19 }
  0xa7   :  { %v604_v35 = vadd.f32 %v603_v22, %v591_v34 }
  0xac   :  { %v616_v25 = vpop.f32.mrf.mxu2  ;;  %v592_v27 = vpop.f32.mrf.mxu0 }
  0xad   :  { %v629_v26 = vpop.f32.mrf.mxu3  ;;  %v605_v30 = vpop.f32.mrf.mxu1  ;;  %v617_v36 = vadd.f32 %v616_v25, %v604_v35 }
  0xaf   :  { %v630_v37 = vadd.f32 %v629_v26, %v617_v36 }
  0xb4   :  { %v618_v32 = vpop.f32.mrf.mxu2 }
  0xb5   :  { %v631_v33 = vpop.f32.mrf.mxu3 }
  0xc4   :  { %v642_v38 = vpop.f32.mrf.mxu0 }
  0xc5   :  { %v655_v39 = vpop.f32.mrf.mxu1  ;;  %v643_v40 = vadd.f32 %v642_v38, %v630_v37 }
  0xc7   :  { %v656_v41 = vadd.f32 %v655_v39, %v643_v40 }
  0xcc   :  { %v668_v42 = vpop.f32.mrf.mxu2  ;;  %v644_v45 = vpop.f32.mrf.mxu0 }
  0xcd   :  { %v681_v43 = vpop.f32.mrf.mxu3  ;;  %v669_v44 = vadd.f32 %v668_v42, %v656_v41  ;;  %v657_v46 = vpop.f32.mrf.mxu1 }
  0xcf   :  { %v682_v47 = vadd.f32 %v681_v43, %v669_v44 }
  0xd1   :  { %v685_v48 = vmax.f32 %v682_v47, 0.0 }
  0xd3   :  { %v686_v49 = vpack.c.bf16 %v685_v48, %v685_v48 }
  0xd4   :  { %v670_v50 = vpop.f32.mrf.mxu2 }
  0xd5   :  { %v683_v51 = vpop.f32.mrf.mxu3  ;;  %763 = vmatmul.bf16.vlgmr.msra.gmra.mxu0 %v686_v49  ;;  %846 = vmatmul.bf16.vlgmr.msra.gmra.mxu1 %v686_v49 }
 0x152   :  { %v764_v54 = vpop.f32.mrf.mxu0  ;;  %v847_v55 = vpop.f32.mrf.mxu1 }
 0x153   :  { %v765_v56 = vadd.f32 %v1293_v52, %v764_v54  ;;  %v848_v57 = vadd.f32 %v1294_v53, %v847_v55 }
 0x155   :  { %v851_v58 = vmul.f32 1.442695, %v848_v57  ;;  %769 = vst.msk [vmem:[#allocation5] sm:$0x3] %vm768_vm0, %v765_v56 }
 0x156   :  { %864 = dma.vmem_to_hbm [thread:$0]  %s860_s24, 32, %s862_s27, [#allocation4]  }
 0x157   :  { %1295 = vpow2.f32 %v851_v58 }
 0x15a   :  { %v766_v59 = vpop.f32.mrf.mxu0  ;;  %v849_v60 = vpop.f32.mrf.mxu1 }
 0x15d   :  { %v1296_v61 = vpop.eup %1295 }
 0x15e   :  { %853 = vst.msk [vmem:[#allocation6] sm:$0x3] %vm768_vm0, %v1296_v61 }
 0x15f   :  { %875 = dma.vmem_to_hbm [thread:$0]  %s871_s6, 32, %s873_s30, [#allocation7]  }
 0x160   :  { %1371 = dma.done.wait [#allocation4], 32  }
 0x161   :  { %1372 = vsyncadd [#allocation4], 4294967264 }
 0x162   :  { %1373 = dma.done.wait [#allocation7], 32  }
 0x163   :  { %1374 = vsyncadd [#allocation7], 4294967264 }
 0x164   :  { %884 = vsyncpa [#allocation3], 1 }
 0x165   :  { %885 = vsyncpa [#allocation4], 1 }
 0x166   :  { %886 = vsyncpa [#allocation7], 1 }

</bundles_post_ra>
